<compile_context>
chip_gen: v6e
topology: v6e:2x2x1
jax: 0.10.0
libtpu: 0.0.40
codegen_flags: <defaults>
</compile_context>

<pallas_src>
import jax
import jax.numpy as jnp
from jax import lax
from jax.experimental import pallas as pl
from jax.experimental.pallas import tpu as pltpu


def bimatch_gate_kernel(src_ref, qry_ref, wt_ref, wb_ref, mw_ref, bias_ref,
                        out_ref):
    # src_ref : (TB*S, H)  flattened source rows (MXU input dtype)
    # qry_ref : (TB, Q, H) queries (same dtype as src_ref)
    # wt_ref  : (H, H)     W.weight pre-transposed to (in, out)
    # wb_ref  : (1, H)     W.bias, f32
    # mw_ref  : (Q, 1)     map_linear.weight as a column, f32
    # bias_ref: (1, S)     gate bias with map_linear.bias folded in, f32
    # out_ref : (TB, S)    gates
    tb, q, h = qry_ref.shape
    s = out_ref.shape[1]

    # Shared Linear for all TB*S rows in one MXU matmul (f32 accumulation).
    ws = jnp.dot(src_ref[...], wt_ref[...],
                 preferred_element_type=jnp.float32) + wb_ref[...]   # (TB*S, H)

    # Batched contraction over H: (TB, Q, H) x (TB, S, H) -> (TB, Q, S).
    # S lives in the lane dimension, so every following VPU/EUP op runs on
    # lane-dense vregs and the MXU matmul has N = S (not N = Q).
    ws3 = ws.reshape(tb, s, h).astype(src_ref.dtype)
    scores = lax.dot_general(
        qry_ref[...], ws3,
        dimension_numbers=(((2,), (2,)), ((0,), (0,))),
        preferred_element_type=jnp.float32)                          # (TB, Q, S)

    scores = jnp.tanh(scores)

    # map_linear as VPU multiply + sublane (Q) reduction — no N=1 MXU matmul,
    # no lane-width-1 intermediate. (Q, 1) broadcasts against (TB, Q, S).
    mapped = jnp.sum(scores * mw_ref[...], axis=1)                   # (TB, S)

    out_ref[...] = jax.nn.sigmoid(mapped + bias_ref[...]).astype(out_ref.dtype)


def _round_up(x, m):
    return -(-x // m) * m


def _vmem_capacity_bytes():
    """Per-TensorCore VMEM capacity; conservative fallback if unavailable."""
    try:
        cap = getattr(pltpu.get_tpu_info(), "vmem_capacity_bytes", None)
        if cap:
            return int(cap)
    except Exception:
        pass
    return 64 << 20  # v7x per-core VMEM (smallest across v5e/v6e/v7x)


def _vmem_estimate_bytes(tb, S, Q, H, in_itemsize):
    """VMEM footprint for a (tb,)-batch tile, including the ws / score
    intermediates (not just the pipeline buffers)."""
    def tile(r, c, isz):
        return _round_up(r, 8) * _round_up(c, 128) * isz
    src = 2 * tile(tb * S, H, in_itemsize)                 # double-buffered stream
    qry = 2 * tb * tile(Q, H, in_itemsize)
    params = (tile(H, H, in_itemsize) + tile(1, H, 4) + tile(Q, 1, 4)
              + tile(1, S, 4))
    out = 2 * tile(tb, S, 4)
    ws = tile(tb * S, H, 4) + tile(tb * S, H, in_itemsize)  # f32 acc + cast copy
    scores = 2 * tb * tile(Q, S, 4)                         # scores + tanh output
    return src + qry + params + out + ws + scores


def _choose_tb(B, S, Q, H, in_itemsize, vmem_cap):
    """Largest batch tile that (a) keeps the (tb*S,H)/(tb,S) BlockSpecs legal
    (tb % 8 == 0 or tb == B), (b) fits ~60% of VMEM, and (c) leaves >= 2 grid
    steps when possible so both v7x TensorCores get work."""
    budget = int(0.60 * vmem_cap)
    cands = [t for t in range(8, B + 1, 8) if B % t == 0] or [B]
    multi = [t for t in cands if B // t >= 2]
    pool = multi if multi else cands
    fitting = [t for t in pool
               if _vmem_estimate_bytes(t, S, Q, H, in_itemsize) <= budget]
    if fitting:
        return max(fitting)
    return min(cands)


def bimatch_gate(source, query, w, w_b, map_w, map_b, bias, *, mxu_dtype=None):
    """source: (B, S, H), query: (B, Q, H) -> gates: (B, S).

    w: (H, H) = W.weight, w_b: (H,), map_w: (Q,), map_b: scalar, bias: (S,).
    mxu_dtype: optional dtype (e.g. jnp.bfloat16) for the two MXU
    contractions; accumulation and all elementwise math stay f32.
    """
    B, S, H = source.shape
    _, Q, _ = query.shape
    out_dtype = source.dtype

    in_dtype = jnp.dtype(mxu_dtype) if mxu_dtype is not None else jnp.dtype(out_dtype)
    in_itemsize = in_dtype.itemsize

    vmem_cap = _vmem_capacity_bytes()
    tb = _choose_tb(B, S, Q, H, in_itemsize, vmem_cap)

    # Host-side (one-time) parameter / layout prep.
    wt = jnp.asarray(w).T.astype(in_dtype)                          # (in, out)
    wb2 = jnp.asarray(w_b).astype(jnp.float32).reshape(1, H)
    mw2 = jnp.asarray(map_w).astype(jnp.float32).reshape(Q, 1)
    bias_eff = (jnp.asarray(bias).astype(jnp.float32)
                + jnp.asarray(map_b).astype(jnp.float32).reshape(())).reshape(1, S)
    src_flat = source.reshape(B * S, H).astype(in_dtype)            # contiguous
    qry = query.astype(in_dtype)
    # NOTE: for H < 128 the MXU lanes are underfilled; zero-padding H to 128 on
    # the host would recover MXU efficiency, but at such sizes the kernel is
    # overhead/memory-bound and the lane-layout / unroll fixes dominate.

    est = _vmem_estimate_bytes(tb, S, Q, H, in_itemsize)
    vmem_limit = int(min(max(2 * est, 32 << 20), int(0.85 * vmem_cap)))
    if est > vmem_limit:
        vmem_limit = int(min(int(1.1 * est), vmem_cap))

    out = pl.pallas_call(
        bimatch_gate_kernel,
        out_shape=jax.ShapeDtypeStruct((B, S), out_dtype),
        grid_spec=pltpu.PrefetchScalarGridSpec(
            num_scalar_prefetch=0,
            grid=(B // tb,),
            in_specs=[
                pl.BlockSpec((tb * S, H), lambda b: (b, 0)),    # flattened source
                pl.BlockSpec((tb, Q, H), lambda b: (b, 0, 0)),  # query
                pl.BlockSpec((H, H), lambda b: (0, 0)),         # W.weight^T
                pl.BlockSpec((1, H), lambda b: (0, 0)),         # W.bias
                pl.BlockSpec((Q, 1), lambda b: (0, 0)),         # map_linear.weight
                pl.BlockSpec((1, S), lambda b: (0, 0)),         # gate bias (+map_b)
            ],
            out_specs=pl.BlockSpec((tb, S), lambda b: (b, 0)),
        ),
        compiler_params=pltpu.CompilerParams(
            dimension_semantics=("parallel",),
            vmem_limit_bytes=vmem_limit),
    )(src_flat, qry, wt, wb2, mw2, bias_eff)

    return out


def reference(source, query, w, w_b, map_w, map_b, bias):
    scores = jnp.einsum('bsh,oh->bso', source, w) + w_b
    scores = jnp.einsum('bso,bqo->bsq', scores, query)
    scores = jnp.tanh(scores)
    scores = jnp.einsum('bsq,q->bs', scores, map_w) + map_b
    return jax.nn.sigmoid(scores + bias[None, :])


if __name__ == "__main__":
    B, S, Q, H = 2, 16, 8, 32

    key = jax.random.PRNGKey(0)
    k1, k2, k3, k4, k5, k6 = jax.random.split(key, 6)

    source = jax.random.normal(k1, (B, S, H), dtype=jnp.float32)
    query = jax.random.normal(k2, (B, Q, H), dtype=jnp.float32)

    # Deterministic parameters (shapes per BiMatchGate.__init__).
    w = jax.random.normal(k3, (H, H), dtype=jnp.float32) * (1.0 / jnp.sqrt(H))
    w_b = jax.random.normal(k4, (H,), dtype=jnp.float32) * 0.01
    map_w = jax.random.normal(k5, (Q,), dtype=jnp.float32) * (1.0 / jnp.sqrt(Q))
    map_b = jax.random.normal(k6, (), dtype=jnp.float32) * 0.01
    bias = jnp.zeros((S,), dtype=jnp.float32)   # torch.nn.init.zeros_

    ref = reference(source, query, w, w_b, map_w, map_b, bias)

    # f32 MXU path: must match the f32 reference tightly.
    gates = jax.block_until_ready(
        bimatch_gate(source, query, w, w_b, map_w, map_b, bias))
    assert gates.shape == (B, S)
    assert jnp.allclose(gates, ref, atol=1e-5, rtol=1e-5), \
        f"f32 max err {jnp.max(jnp.abs(gates - ref))}"

    # bf16 MXU path (f32 accumulation + f32 elementwise): looser tolerance.
    gates_bf16 = jax.block_until_ready(
        bimatch_gate(source, query, w, w_b, map_w, map_b, bias,
                     mxu_dtype=jnp.bfloat16))
    assert jnp.allclose(gates_bf16, ref, atol=5e-2, rtol=0), \
        f"bf16 max err {jnp.max(jnp.abs(gates_bf16 - ref))}"

    print("KERNEL_OK")
</pallas_src>

<mosaic_0001>
module attributes {stable_mosaic.version = 11 : i64} {
  func.func @bimatch_gate_kernel(%arg0: i32, %arg1: memref<32x32xf32, #tpu.memory_space<vmem>>, %arg2: memref<2x8x32xf32, #tpu.memory_space<vmem>>, %arg3: memref<32x32xf32, #tpu.memory_space<vmem>>, %arg4: memref<1x32xf32, #tpu.memory_space<vmem>>, %arg5: memref<8x1xf32, #tpu.memory_space<vmem>>, %arg6: memref<1x16xf32, #tpu.memory_space<vmem>>, %arg7: memref<2x16xf32, #tpu.memory_space<vmem>>) attributes {dimension_semantics = [#tpu.dimension_semantics<parallel>], iteration_bounds = array<i64: 1>, scalar_prefetch = 0 : i64, scratch_operands = 0 : i64, tpu.core_type = #tpu.core_type<tc>, window_params = [{transform_indices = @transform_0, window_bounds = array<i64: 32, 32>}, {transform_indices = @transform_1, window_bounds = array<i64: 2, 8, 32>}, {pipeline_mode = #tpu.pipeline_mode<synchronous>, transform_indices = @transform_2, window_bounds = array<i64: 32, 32>}, {pipeline_mode = #tpu.pipeline_mode<synchronous>, transform_indices = @transform_3, window_bounds = array<i64: 1, 32>}, {pipeline_mode = #tpu.pipeline_mode<synchronous>, transform_indices = @transform_4, window_bounds = array<i64: 8, 1>}, {pipeline_mode = #tpu.pipeline_mode<synchronous>, transform_indices = @transform_5, window_bounds = array<i64: 1, 16>}, {transform_indices = @transform_6, window_bounds = array<i64: 2, 16>}]} {
    %c0 = arith.constant 0 : index
    %c0_0 = arith.constant 0 : index
    %0 = vector.load %arg1[%c0, %c0_0] : memref<32x32xf32, #tpu.memory_space<vmem>>, vector<32x32xf32>
    %c0_1 = arith.constant 0 : index
    %c0_2 = arith.constant 0 : index
    %1 = vector.load %arg3[%c0_1, %c0_2] : memref<32x32xf32, #tpu.memory_space<vmem>>, vector<32x32xf32>
    %cst = arith.constant dense<0.000000e+00> : vector<32x32xf32>
    %2 = tpu.matmul %0, %1, %cst {dimension_numbers = #tpu.dot_dimension_numbers<[1], [0], [0], [1], [0, 0, 1, 1], [], []>} : vector<32x32xf32>, vector<32x32xf32>, vector<32x32xf32> -> vector<32x32xf32>
    %c0_3 = arith.constant 0 : index
    %c0_4 = arith.constant 0 : index
    %3 = vector.load %arg4[%c0_3, %c0_4] : memref<1x32xf32, #tpu.memory_space<vmem>>, vector<1x32xf32>
    %4 = vector.broadcast %3 : vector<1x32xf32> to vector<32x32xf32>
    %5 = arith.addf %2, %4 : vector<32x32xf32>
    %6 = vector.shape_cast %5 : vector<32x32xf32> to vector<2x16x32xf32>
    %c0_5 = arith.constant 0 : index
    %c0_6 = arith.constant 0 : index
    %c0_7 = arith.constant 0 : index
    %7 = vector.load %arg2[%c0_5, %c0_6, %c0_7] : memref<2x8x32xf32, #tpu.memory_space<vmem>>, vector<2x8x32xf32>
    %cst_8 = arith.constant dense<0.000000e+00> : vector<2x8x16xf32>
    %8 = tpu.matmul %7, %6, %cst_8 {dimension_numbers = #tpu.dot_dimension_numbers<[2], [2], [1], [1], [0, 0, 0, 1, 1, 1], [0], [0]>} : vector<2x8x32xf32>, vector<2x16x32xf32>, vector<2x8x16xf32> -> vector<2x8x16xf32>
    %9 = math.tanh %8 : vector<2x8x16xf32>
    %c0_9 = arith.constant 0 : index
    %c0_10 = arith.constant 0 : index
    %10 = vector.load %arg5[%c0_9, %c0_10] : memref<8x1xf32, #tpu.memory_space<vmem>>, vector<8x1xf32>
    %11 = vector.shape_cast %10 : vector<8x1xf32> to vector<1x8x1xf32>
    %12 = vector.broadcast %11 : vector<1x8x1xf32> to vector<2x8x16xf32>
    %13 = arith.mulf %9, %12 : vector<2x8x16xf32>
    %cst_11 = arith.constant dense<0.000000e+00> : vector<2x16xf32>
    %14 = vector.multi_reduction <add>, %13, %cst_11 [1] : vector<2x8x16xf32> to vector<2x16xf32>
    %c0_12 = arith.constant 0 : index
    %c0_13 = arith.constant 0 : index
    %15 = vector.load %arg6[%c0_12, %c0_13] : memref<1x16xf32, #tpu.memory_space<vmem>>, vector<1x16xf32>
    %16 = vector.broadcast %15 : vector<1x16xf32> to vector<2x16xf32>
    %17 = arith.addf %14, %16 : vector<2x16xf32>
    %18 = arith.negf %17 : vector<2x16xf32>
    %19 = math.exp %18 : vector<2x16xf32>
    %cst_14 = arith.constant 1.000000e+00 : f32
    %20 = vector.broadcast %cst_14 : f32 to vector<2x16xf32>
    %21 = arith.addf %20, %19 : vector<2x16xf32>
    %22 = arith.divf %20, %21 : vector<2x16xf32>
    %c0_15 = arith.constant 0 : index
    %c0_16 = arith.constant 0 : index
    %23 = vector.load %arg7[%c0_15, %c0_16] : memref<2x16xf32, #tpu.memory_space<vmem>>, vector<2x16xf32>
    tpu.vector_store %arg7[%c0_15, %c0_16], %22 {strides = array<i32>} : memref<2x16xf32, #tpu.memory_space<vmem>>, vector<2x16xf32>,
    return
  }
  func.func @transform_0(%arg0: i32) -> (i32, i32) {
    %c0_i32 = arith.constant 0 : i32
    %c0_i32_0 = arith.constant 0 : i32
    return %arg0, %c0_i32 : i32, i32
  }
  func.func @transform_1(%arg0: i32) -> (i32, i32, i32) {
    %c0_i32 = arith.constant 0 : i32
    %c0_i32_0 = arith.constant 0 : i32
    %c0_i32_1 = arith.constant 0 : i32
    return %arg0, %c0_i32, %c0_i32_0 : i32, i32, i32
  }
  func.func @transform_2(%arg0: i32) -> (i32, i32) {
    %c0_i32 = arith.constant 0 : i32
    %c0_i32_0 = arith.constant 0 : i32
    %c0_i32_1 = arith.constant 0 : i32
    return %c0_i32, %c0_i32_0 : i32, i32
  }
  func.func @transform_3(%arg0: i32) -> (i32, i32) {
    %c0_i32 = arith.constant 0 : i32
    %c0_i32_0 = arith.constant 0 : i32
    %c0_i32_1 = arith.constant 0 : i32
    return %c0_i32, %c0_i32_0 : i32, i32
  }
  func.func @transform_4(%arg0: i32) -> (i32, i32) {
    %c0_i32 = arith.constant 0 : i32
    %c0_i32_0 = arith.constant 0 : i32
    %c0_i32_1 = arith.constant 0 : i32
    return %c0_i32, %c0_i32_0 : i32, i32
  }
  func.func @transform_5(%arg0: i32) -> (i32, i32) {
    %c0_i32 = arith.constant 0 : i32
    %c0_i32_0 = arith.constant 0 : i32
    %c0_i32_1 = arith.constant 0 : i32
    return %c0_i32, %c0_i32_0 : i32, i32
  }
  func.func @transform_6(%arg0: i32) -> (i32, i32) {
    %c0_i32 = arith.constant 0 : i32
    %c0_i32_0 = arith.constant 0 : i32
    return %arg0, %c0_i32 : i32, i32
  }
}

</mosaic_0001>

<bundles_post_ra>
// kernel: tpu_custom_call.1
= control target key start
LH: loop header
LB: loop body
LE: loop exit
PB: predicated region body
PF: predicated region fallthrough
CT: control target
= control target key end

     0   :  { %11 = vsyncpa [#allocation3], 0  ;;  %s647_s0 = inlined_call_operand.hbm [shape: f32[32,32], index: 0, kind: input, shape index: {}]   ;;  %s648_s1 = inlined_call_operand.hbm [shape: f32[2,8,32], index: 1, kind: input, shape index: {}]   ;;  %s649_s2 = inlined_call_operand.hbm [shape: f32[32,32], index: 2, kind: input, shape index: {}]   ;;  %s650_s3 = inlined_call_operand.vmem [shape: f32[1,32], index: 3, kind: input, shape index: {}]   ;;  %s651_s4 = inlined_call_operand.vmem [shape: f32[8,1], index: 4, kind: input, shape index: {}]   ;;  %s652_s5 = inlined_call_operand.vmem [shape: f32[1,16], index: 5, kind: input, shape index: {}]   ;;  %s653_s6 = inlined_call_operand.hbm [shape: f32[2,16], index: 6, kind: output, shape index: {}]  }
   0x1   :  { %12 = vsyncpa [#allocation6], 0 }
   0x2   :  { %13 = vsyncpa [#allocation4], 0  ;;  %s572_s21 = smov [#allocation5]   ;;  %s573_s23 = smov [#allocation2]  }
   0x3   :  { %s31_s22 = sshll.u32 %s572_s21, 4  ;;  %s19_s24 = sshll.u32 %s573_s23, 4  ;;  %s32_s22 = int_to_ptr.vmem [resolvable:$true] %s31_s22  ;;  %s20_s24 = int_to_ptr.vmem [resolvable:$true] %s19_s24 }
   0x4   :  { %s494_s25 = scalar_lea.vmem %s32_s22, 256  ;;  %p499_p1 = scmp.lt.s32.totalorder %s32_s22, %s32_s22 }
   0x5   :  { %p495_p0 = scmp.ne.s32.totalorder %s32_s22, %s494_s25  ;;  %p500_p2 = scmp.lt.s32.totalorder %s494_s25, %s494_s25 }
   0x7   :  { %p501_p3 = por %p500_p2, %p499_p1 }
   0x9   :  { %p502_p4 = pnand %p501_p3, %p495_p0 }
   0xb   :  { %505 = shalt.err (!%p502_p4)
}
   0xc   :  { %s574_s26 = smov 128   ;;  %s575_s27 = smov 8  }
   0xd   :  { %37 = dma.hbm_to_vmem [thread:$0]  %s648_s1, 256, %s32_s22, [#allocation6], %s574_s26, %s574_s26, %s575_s27  }
   0xe   :  { %s514_s30 = scalar_lea.vmem %s20_s24, 512  ;;  %p519_p6 = scmp.lt.s32.totalorder %s20_s24, %s20_s24 }
   0xf   :  { %p515_p5 = scmp.ne.s32.totalorder %s20_s24, %s514_s30  ;;  %p520_p7 = scmp.lt.s32.totalorder %s514_s30, %s514_s30 }
  0x11   :  { %p521_p8 = por %p520_p7, %p519_p6 }
  0x13   :  { %p522_p9 = pnand %p521_p8, %p515_p5 }
  0x15   :  { %525 = shalt.err (!%p522_p9)
}
  0x16   :  { %25 = dma.hbm_to_vmem [thread:$0]  %s647_s0, 512, %s20_s24, [#allocation3], %s574_s26, %s574_s26, %s575_s27  }
  0x17   :  { %s576_s9 = smov [#allocation7]  }
  0x18   :  { %s43_s10 = sshll.u32 %s576_s9, 4  ;;  %s44_s10 = int_to_ptr.vmem [resolvable:$true] %s43_s10 }
  0x19   :  { %s534_s11 = scalar_lea.vmem %s44_s10, 512  ;;  %p539_p11 = scmp.lt.s32.totalorder %s44_s10, %s44_s10 }
  0x1a   :  { %p535_p10 = scmp.ne.s32.totalorder %s44_s10, %s534_s11  ;;  %p540_p12 = scmp.lt.s32.totalorder %s534_s11, %s534_s11 }
  0x1c   :  { %p541_p13 = por %p540_p12, %p539_p11 }
  0x1e   :  { %p542_p0 = pnand %p541_p13, %p535_p10 }
  0x20   :  { %545 = shalt.err (!%p542_p0)
}
  0x21   :  { %49 = dma.hbm_to_vmem [thread:$0]  %s649_s2, 512, %s44_s10, [#allocation6], %s574_s26, %s574_s26, %s575_s27  }
  0x22   :  { %566 = dma.done.wait [#allocation3], 512  }
  0x23   :  { %567 = vsyncadd [#allocation3], 4294966784 }
  0x24   :  { %568 = dma.done.wait [#allocation6], 768  }
  0x25   :  { %569 = vsyncadd [#allocation6], 4294966528  ;;  %vm80_vm0 = vcmask 261120   ;;  %v72_v0 = vld [vmem:[#allocation7 + $0x18] sm:$0xff]  ;;  %v71_v1 = vld [vmem:[#allocation7 + $0x10] sm:$0xff]  ;;  %v577_v8 = vmov 0.0  }
  0x26   :  { %436 = vmatprep.subr.mxu0 %v72_v0  ;;  %v65_v2 = vld [vmem:[#allocation2] sm:$0xff]  ;;  %v70_v3 = vld [vmem:[#allocation7 + $0x8] sm:$0xff]  ;;  %v69_v4 = vld [vmem:[#allocation7] sm:$0xff]  ;;  %450 = vmatprep.subr.mxu1 %v577_v8  ;;  %vm578_vm1 = vmmov 0   ;;  %v579_v10 = vmov 0   ;;  %vm348_vm2 = vcmask 130048  }
  0x27   :  { %437 = vmatpush3.msra.mxu0 %v72_v0  ;;  %444 = vmatprep.mubr.msk.f32.mxu0 %vm80_vm0, %v65_v2  ;;  %v66_v5 = vld [vmem:[#allocation2 + $0x8] sm:$0xff]  ;;  %v67_v6 = vld [vmem:[#allocation2 + $0x10] sm:$0xff]  ;;  %v68_v7 = vld [vmem:[#allocation2 + $0x18] sm:$0xff]  ;;  %s580_s15 = smov [#allocation8]   ;;  %vm387_vm3 = vcmask 1041409   ;;  %vm390_vm4 = vcmask 123904  }
  0x28   :  { %438 = vmatprep.subr.mxu0 %v71_v1  ;;  %454 = vmatprep.mubr.msk.f32.mxu1 %vm578_vm1, %v577_v8  ;;  %v340_v9 = vld [vmem:[%s651_s4] sm:$0xff]  ;;  %v179_v21 = vld [vmem:[#allocation5 + $0x8] sm:$0xff]  ;;  %s398_s16 = sshll.u32 %s580_s15, 4  ;;  %s399_s16 = int_to_ptr.vmem [resolvable:$true] %s398_s16 }
  0x29   :  { %439 = vmatpush3.msra.mxu0 %v71_v1  ;;  %473 = vset.pattern.permute.xlu0 %v579_v10  ;;  %v408_v11 = vld [vmem:[%s650_s3] ss:$0 sm:$0xff]  ;;  %p551_p2 = scmp.lt.s32.totalorder %s399_s16, %s399_s16 }
  0x2a   :  { %440 = vmatprep.subr.mxu0 %v70_v3  ;;  %343 = vperm.xlu0 %473, %v340_v9   ;;  %v178_v19 = vld [vmem:[#allocation5] sm:$0xff] }
  0x2b   :  { %441 = vmatpush3.msra.mxu0 %v70_v3  ;;  %v419_v41 = vld [vmem:[%s652_s5] ss:$0 sm:$0xff]  ;;  %s546_s5 = scalar_lea.vmem %s399_s16, 32 }
  0x2c   :  { %442 = vmatprep.subr.mxu0 %v69_v4  ;;  %p547_p1 = scmp.ne.s32.totalorder %s399_s16, %s546_s5  ;;  %p552_p3 = scmp.lt.s32.totalorder %s546_s5, %s546_s5 }
  0x2d   :  { %443 = vmatpush3.msra.mxu0 %v69_v4 }
  0x2e   :  { %445 = vmatmul.mubr.msk.f32.vlgmr.msra.gmra.mxu0 %vm80_vm0, %v66_v5  ;;  %457 = vmatprep.subr.mxu0 %v577_v8  ;;  %p553_p4 = por %p552_p3, %p551_p2 }
  0x2f   :  { %447 = vmatprep.mubr.msk.f32.mxu0 %vm80_vm0, %v67_v6 }
  0x30   :  { %p554_p5 = pnand %p553_p4, %p547_p1 }
  0x32   :  { %448 = vmatmul.mubr.msk.f32.gmra.mxu0 %vm80_vm0, %v68_v7 }
  0x33   :  { %461 = vmatprep.mubr.msk.f32.mxu0 %vm578_vm1, %v577_v8 }
  0xa5   :  { %v344_v26 = vpop.permute.xlu0 %343 }
  0xee   :  { %v446_v12 = vpop.f32.mrf.mxu0 }
  0xef   :  { %v165_v13 = vadd.f32 %v446_v12, %v408_v11 }
  0xf0   :  { %v159_v14 = vpop.f32.mrf.mxu0 }
  0xf1   :  { %451 = vmatpush3.xpose.msk.msra.mxu1 %vm80_vm0, %v165_v13  ;;  %v160_v16 = vadd.f32 %v408_v11, %v159_v14 }
  0xf2   :  { %v449_v15 = vpop.f32.mrf.mxu0  ;;  %452 = vmatprep.subr.mxu1 %v577_v8 }
  0xf3   :  { %v175_v17 = vadd.f32 %v449_v15, %v408_v11 }
  0xf4   :  { %v169_v18 = vpop.f32.mrf.mxu0 }
  0xf5   :  { %453 = vmatpush3.xpose.msk.msra.mxu1 %vm80_vm0, %v160_v16  ;;  %458 = vmatpush3.xpose.msk.msra.mxu0 %vm80_vm0, %v175_v17  ;;  %v170_v20 = vadd.f32 %v408_v11, %v169_v18 }
  0xf6   :  { %459 = vmatprep.subr.mxu0 %v577_v8 }
  0xf8   :  { %455 = vmatmul.mubr.msk.f32.vlgmr.msra.gmra.mxu1 %vm80_vm0, %v178_v19 }
  0xf9   :  { %460 = vmatpush3.xpose.msk.msra.mxu0 %vm80_vm0, %v170_v20 }
  0xfc   :  { %462 = vmatmul.mubr.msk.f32.vlgmr.msra.gmra.mxu0 %vm80_vm0, %v179_v21 }
 0x1b8   :  { %v255_v22 = vpop.f32.mrf.mxu1 }
 0x1b9   :  { %474 = vtanh.f32 %v255_v22 }
 0x1ba   :  { %v456_v23 = vpop.f32.mrf.mxu1 }
 0x1bc   :  { %v334_v24 = vpop.f32.mrf.mxu0 }
 0x1bd   :  { %476 = vtanh.f32 %v334_v24 }
 0x1be   :  { %v463_v25 = vpop.f32.mrf.mxu0 }
 0x1c6   :  { %v475_v27 = vpop.eup %474 }
 0x1c7   :  { %v346_v28 = vmul.f32 %v475_v27, %v344_v26 }
 0x1c9   :  { %v349_v29 = vsel %vm348_vm2, %v346_v28, 0.0 }
 0x1ca   :  { %v477_v30 = vpop.eup %476  ;;  %v350_v31 = vrot.slane %v349_v29, 4 }
 0x1cb   :  { %v347_v32 = vmul.f32 %v477_v30, %v344_v26 }
 0x1cc   :  { %v351_v33 = vadd.f32 %v350_v31, %v349_v29 }
 0x1cd   :  { %v356_v34 = vsel %vm348_vm2, %v347_v32, 0.0 }
 0x1ce   :  { %v352_v35 = vrot.slane %v351_v33, 2  ;;  %v357_v36 = vrot.slane %v356_v34, 4 }
 0x1d0   :  { %v353_v37 = vadd.f32 %v352_v35, %v351_v33  ;;  %v358_v38 = vadd.f32 %v357_v36, %v356_v34 }
 0x1d2   :  { %v354_v39 = vrot.slane %v353_v37, 1  ;;  %v359_v40 = vrot.slane %v358_v38, 2 }
 0x1d4   :  { %v355_v42 = vadd.f32 %v354_v39, %v353_v37  ;;  %v360_v43 = vadd.f32 %v359_v40, %v358_v38 }
 0x1d6   :  { %v361_v44 = vrot.slane %v360_v43, 1  ;;  %v370_v45 = vadd.f32 %v419_v41, %v355_v42 }
 0x1d8   :  { %v362_v46 = vadd.f32 %v361_v44, %v360_v43  ;;  %v420_v47 = vmul.f32 -1.442695, %v370_v45 }
 0x1da   :  { %v371_v48 = vadd.f32 %v419_v41, %v362_v46  ;;  %478 = vpow2.f32 %v420_v47 }
 0x1dc   :  { %v421_v49 = vmul.f32 -1.442695, %v371_v48 }
 0x1de   :  { %480 = vpow2.f32 %v421_v49 }
 0x1e7   :  { %v479_v50 = vpop.eup %478 }
 0x1e8   :  { %v378_v52 = vadd.f32 1.0, %v479_v50 }
 0x1eb   :  { %v481_v51 = vpop.eup %480 }
 0x1ec   :  { %v379_v53 = vadd.f32 1.0, %v481_v51 }
 0x1ee   :  { %482 = vrcp.f32 %v379_v53 }
 0x1ef   :  { %484 = vrcp.f32 %v378_v52 }
 0x1fb   :  { %v483_v54 = vpop.eup %482 }
 0x1fc   :  { %v386_v55 = vrot.slane %v483_v54, 7  ;;  %v485_v56 = vpop.eup %484 }
 0x1fe   :  { %v388_v57 = vsel %vm387_vm3, %v386_v55, %v485_v56 }
 0x1ff   :  { %391 = vst.msk [vmem:[#allocation8] sm:$0x3] %vm390_vm4, %v388_v57 }
 0x200   :  { %557 = shalt.err (!%p554_p5)
}
 0x201   :  { %401 = dma.vmem_to_hbm [thread:$0]  %s399_s16, 32, %s653_s6, [#allocation4]  }
 0x202   :  { %570 = dma.done.wait [#allocation4], 32  }
 0x203   :  { %571 = vsyncadd [#allocation4], 4294967264 }
 0x204   :  { %405 = vsyncpa [#allocation3], 1 }
 0x205   :  { %406 = vsyncpa [#allocation6], 1 }
 0x206   :  { %407 = vsyncpa [#allocation4], 1 }

</bundles_post_ra>
